<compile_context>
chip_gen: v7x
topology: tpu7x:2x2x1
jax: 0.10.0
libtpu: 0.0.40
codegen_flags: <defaults>
</compile_context>

<pallas_src>
import jax
import jax.numpy as jnp
from jax import lax
from jax.experimental import pallas as pl
from jax.experimental.pallas import tpu as pltpu


_MAX_DMA_CHUNKS = 4               # a handful of in-flight DMAs is plenty
_CHUNK_THRESHOLD_BYTES = 1 << 20  # don't bother splitting copies < 1 MiB


def _chunk_bounds(leading: int, nbytes: int):
    """Static (start, size) splits of axis 0 for the HBM->HBM copy."""
    if leading <= 1 or nbytes < _CHUNK_THRESHOLD_BYTES:
        return [(0, leading)]
    n = min(_MAX_DMA_CHUNKS, leading)
    base, rem = divmod(leading, n)
    bounds, start = [], 0
    for i in range(n):
        size = base + (1 if i < rem else 0)
        bounds.append((start, size))
        start += size
    return bounds


def _make_dma_copy_kernel(chunks):
    """Kernel copying x_ref -> o_ref with len(chunks) direct HBM->HBM DMAs."""

    def kernel(x_ref, o_ref, sem):
        if len(chunks) == 1:
            cp = pltpu.make_async_copy(x_ref, o_ref, sem.at[0])
            cp.start()
            cp.wait()
            return
        copies = []
        for idx, (start, size) in enumerate(chunks):
            cp = pltpu.make_async_copy(
                x_ref.at[pl.ds(start, size)],
                o_ref.at[pl.ds(start, size)],
                sem.at[idx],
            )
            cp.start()
            copies.append(cp)
        # Wait only after all starts so the DMA engine drains them concurrently.
        for cp in copies:
            cp.wait()

    return kernel


def _pallas_copy(x: jax.Array) -> jax.Array:
    """Bit-exact copy of `x` via direct HBM->HBM DMA (no VMEM round-trip)."""
    nbytes = x.size * jnp.dtype(x.dtype).itemsize
    chunks = _chunk_bounds(x.shape[0], nbytes)
    return pl.pallas_call(
        _make_dma_copy_kernel(chunks),
        out_shape=jax.ShapeDtypeStruct(x.shape, x.dtype),
        in_specs=[pl.BlockSpec(memory_space=pl.ANY)],
        out_specs=pl.BlockSpec(memory_space=pl.ANY),
        scratch_shapes=[pltpu.SemaphoreType.DMA((len(chunks),))],
        cost_estimate=pl.CostEstimate(
            flops=0, transcendentals=0, bytes_accessed=2 * nbytes
        ),
    )(x)


# ----------------------------------------------------------------------------
# Public wrappers
# ----------------------------------------------------------------------------
def squeeze(x: jax.Array, dim: int) -> jax.Array:
    """Zero-cost equivalent of torch.squeeze(x, dim): metadata-only rank change.

    Recommended production path (no kernel, no HBM traffic).
    """
    dim = dim + x.ndim if dim < 0 else dim
    if x.shape[dim] != 1:
        return x
    return lax.squeeze(x, (dim,))


def pallas_squeeze(x: jax.Array, dim: int) -> jax.Array:
    """torch.squeeze(x, dim) semantics with the data copy done by a Pallas kernel."""
    dim = dim + x.ndim if dim < 0 else dim
    if x.shape[dim] != 1:
        # torch.squeeze(dim) is a no-op when the dim is not size 1.
        return x

    out_shape = tuple(s for i, s in enumerate(x.shape) if i != dim)
    if x.size == 0 or len(out_shape) == 0:
        # Degenerate cases: nothing worth DMA'ing through a kernel.
        return jnp.reshape(x, out_shape)

    # Reshape of a contiguous array is metadata-only (free); the kernel then
    # copies two identically shaped HBM buffers directly.
    return _pallas_copy(jnp.reshape(x, out_shape))


# ----------------------------------------------------------------------------
# Demo / self-test
# ----------------------------------------------------------------------------
if __name__ == "__main__":
    key = jax.random.PRNGKey(0)

    # Small NCHW-style input with a size-1 channel dim to be squeezed.
    x = jax.random.normal(key, (2, 1, 16, 32), dtype=jnp.float32)
    dim = 1

    y = pallas_squeeze(x, dim)
    jax.block_until_ready(y)

    y_ref = jnp.squeeze(x, axis=dim)
    assert y.shape == y_ref.shape == (2, 16, 32), y.shape
    assert y.dtype == x.dtype
    assert jnp.array_equal(y, y_ref)

    # Negative dim and rank-reduction through the same DMA kernel.
    x2 = jax.random.normal(jax.random.PRNGKey(1), (1, 8, 128), dtype=jnp.bfloat16)
    y2 = pallas_squeeze(x2, -3)
    jax.block_until_ready(y2)
    assert y2.shape == (8, 128)
    assert jnp.array_equal(y2, jnp.squeeze(x2, axis=0))

    # Exercise the multi-DMA (chunked) path: exactly 1 MiB -> 4 chunks.
    x3 = jax.random.normal(jax.random.PRNGKey(2), (8, 1, 128, 256), dtype=jnp.float32)
    y3 = pallas_squeeze(x3, 1)
    jax.block_until_ready(y3)
    assert y3.shape == (8, 128, 256)
    assert jnp.array_equal(y3, jnp.squeeze(x3, axis=1))

    # Non-size-1 dim must be a no-op, like torch.
    assert pallas_squeeze(x, 0).shape == x.shape

    # Zero-cost (no-kernel) production path parity.
    y_fast = squeeze(x, dim)
    assert y_fast.shape == y_ref.shape
    assert jnp.array_equal(y_fast, y_ref)

    print("KERNEL_OK")
</pallas_src>

<mosaic_0001>
module attributes {stable_mosaic.version = 11 : i64} {
  func.func @kernel(%arg0: memref<2x16x32xf32, #tpu.memory_space<any>>, %arg1: memref<2x16x32xf32, #tpu.memory_space<any>>, %arg2: memref<1x!tpu.dma_semaphore, #tpu.memory_space<semaphore_mem>>) attributes {dimension_semantics = [], scalar_prefetch = 0 : i64, scratch_operands = 1 : i64, tpu.core_type = #tpu.core_type<tc>} {
    %c0_i32 = arith.constant 0 : i32
    %0 = tpu.memref_slice %arg2[%c0_i32] : memref<1x!tpu.dma_semaphore, #tpu.memory_space<semaphore_mem>> -> memref<1x!tpu.dma_semaphore, #tpu.memory_space<semaphore_mem>>
    %1 = tpu.memref_squeeze %0 : memref<1x!tpu.dma_semaphore, #tpu.memory_space<semaphore_mem>> -> memref<!tpu.dma_semaphore, #tpu.memory_space<semaphore_mem>>
    tpu.enqueue_dma source(%arg0 : memref<2x16x32xf32, #tpu.memory_space<any>>) target(%arg1 : memref<2x16x32xf32, #tpu.memory_space<any>>) target_semaphore(%1 : memref<!tpu.dma_semaphore, #tpu.memory_space<semaphore_mem>>)
    %c0_i32_0 = arith.constant 0 : i32
    %2 = tpu.memref_slice %arg2[%c0_i32_0] : memref<1x!tpu.dma_semaphore, #tpu.memory_space<semaphore_mem>> -> memref<1x!tpu.dma_semaphore, #tpu.memory_space<semaphore_mem>>
    %3 = tpu.memref_squeeze %2 : memref<1x!tpu.dma_semaphore, #tpu.memory_space<semaphore_mem>> -> memref<!tpu.dma_semaphore, #tpu.memory_space<semaphore_mem>>
    tpu.wait_dma2 semaphore(%3 : memref<!tpu.dma_semaphore, #tpu.memory_space<semaphore_mem>>) src(%arg0 : memref<2x16x32xf32, #tpu.memory_space<any>>) dst(%arg1 : memref<2x16x32xf32, #tpu.memory_space<any>>)
    return
  }
}

</mosaic_0001>

<bundles_post_ra>
// kernel: tpu_custom_call.1
= control target key start
LH: loop header
LB: loop body
LE: loop exit
PB: predicated region body
PF: predicated region fallthrough
CT: control target
= control target key end

     0   :  { %s35_s6 = smov [#allocation2]   ;;  %s36_s7 = smov [#allocation3]   ;;  %s54_s0 = inlined_call_operand.hbm [shape: f32[2,16,32], index: 0, kind: input, shape index: {}]   ;;  %s55_s1 = inlined_call_operand.hbm [shape: f32[2,16,32], index: 1, kind: output, shape index: {}]  }
   0x1   :  { %s37_s8 = smov 0  }
   0x2   :  { %18 = dma.general %s54_s0, 512, %s55_s1, %s35_s6, %s36_s7, [#allocation4], %s37_s8, 0  }
   0x3   :  { %33 = dma.done.wait [#allocation2], 512 }
   0x4   :  { %34 = vsyncadd [#allocation2], 4294966784 }
   0x5   :  { %23 = vsyncmov [#allocation2] }
   0x8   :  { %s24_s13 = vpop.sfrf %23 }
   0x9   :  { %p29_p0 = scmp.ne.s32.totalorder %s24_s13, 0 }
   0xb   :  { %28 = shalt.err (%p29_p0)  }

</bundles_post_ra>
